<compile_context>
chip_gen: v5e
topology: v5e:2x2
jax: 0.10.0
libtpu: 0.0.40
codegen_flags: <defaults>
</compile_context>

<pallas_src>
import math

import jax
import jax.numpy as jnp
from jax.experimental import pallas as pl
from jax.experimental.pallas import tpu as pltpu


# --------------------------------------------------------------------------
# helpers
# --------------------------------------------------------------------------
def _round_up(n, m):
    return ((n + m - 1) // m) * m


def _pad_and_tiles(n):
    """Padded node count and (row_tile, k_tile) for the adj streaming pass."""
    if n <= 1024:
        n_pad = _round_up(n, 128)
        # single tile in both dims -> no reduction loop, no accumulator scratch
        return n_pad, n_pad, n_pad
    # Large-graph plan: rectangular adj blocks, 512 x 2048 bf16 = 2 MiB each
    # (amortizes the ~0.35 us per-grid-step overhead on all generations; still
    # tiny vs VMEM even double-buffered).
    n_pad = _round_up(n, 2048)
    return n_pad, 512, 2048


def _vmem_limit_bytes(*buf_bytes):
    """Explicit scoped-VMEM budget sized to the tile plan (+headroom)."""
    total = int(sum(buf_bytes))
    # 2x headroom for compiler scratch; stay under v7x's 64 MiB/TC physical.
    return int(min(max(2 * total, 8 << 20), 48 << 20))


# --------------------------------------------------------------------------
# feature matmul:  support = x @ W   (bf16 operands, f32 accumulate)
# --------------------------------------------------------------------------
def _feature_matmul_kernel(x_ref, w_ref, out_ref):
    out_ref[...] = jnp.dot(
        x_ref[...], w_ref[...], preferred_element_type=jnp.float32
    ).astype(out_ref.dtype)


def feature_matmul(x, w, tile):
    n_pad, f = x.shape
    h = w.shape[1]
    vmem = _vmem_limit_bytes(
        2 * tile * f * 2,   # x tile, double-buffered, bf16
        2 * f * h * 2,      # W (resident, budget 2 buffers)
        2 * tile * h * 2,   # out tile, double-buffered, bf16
    )
    return pl.pallas_call(
        _feature_matmul_kernel,
        out_shape=jax.ShapeDtypeStruct((n_pad, h), jnp.bfloat16),
        grid_spec=pltpu.PrefetchScalarGridSpec(
            num_scalar_prefetch=0,
            grid=(n_pad // tile,),
            in_specs=[
                pl.BlockSpec((tile, f), lambda i: (i, 0)),
                pl.BlockSpec((f, h), lambda i: (0, 0)),
            ],
            out_specs=pl.BlockSpec((tile, h), lambda i: (i, 0)),
        ),
        compiler_params=pltpu.CompilerParams(
            dimension_semantics=("parallel",),
            vmem_limit_bytes=vmem,
        ),
    )(x, w)


# --------------------------------------------------------------------------
# Layer 1 (fused):  sup2 = relu(adj @ sup1) @ W2
#   adj streamed in (row_tile, k_tile) bf16 blocks, sup1 fully VMEM-resident.
# --------------------------------------------------------------------------
def adj_layer_fused_w2(adjp, sup1, w2, row_tile, k_tile):
    n_pad = adjp.shape[0]
    h = sup1.shape[1]
    n_rows = n_pad // row_tile
    nk = n_pad // k_tile

    vmem = _vmem_limit_bytes(
        2 * row_tile * k_tile * 2,  # adj tile, double-buffered, bf16
        2 * n_pad * h * 2,          # resident support (budget 2 buffers)
        2 * h * h * 2,              # W2
        2 * row_tile * h * 2,       # out tile, double-buffered, bf16
        row_tile * h * 4,           # f32 accumulator scratch
    )

    if nk == 1:
        # Single reduction step: no accumulator scratch, no pl.when phases.
        def kernel(adj_ref, sup_ref, w2_ref, out_ref):
            acc = jnp.dot(adj_ref[...], sup_ref[...],
                          preferred_element_type=jnp.float32)
            h1 = jnp.maximum(acc, 0.0).astype(jnp.bfloat16)
            out_ref[...] = jnp.dot(
                h1, w2_ref[...], preferred_element_type=jnp.float32
            ).astype(out_ref.dtype)

        return pl.pallas_call(
            kernel,
            out_shape=jax.ShapeDtypeStruct((n_pad, h), jnp.bfloat16),
            grid_spec=pltpu.PrefetchScalarGridSpec(
                num_scalar_prefetch=0,
                grid=(n_rows,),
                in_specs=[
                    pl.BlockSpec((row_tile, k_tile), lambda i: (i, 0)),
                    pl.BlockSpec((n_pad, h), lambda i: (0, 0)),
                    pl.BlockSpec((h, h), lambda i: (0, 0)),
                ],
                out_specs=pl.BlockSpec((row_tile, h), lambda i: (i, 0)),
            ),
            compiler_params=pltpu.CompilerParams(
                dimension_semantics=("parallel",),
                vmem_limit_bytes=vmem,
            ),
        )(adjp, sup1, w2)

    def kernel(adj_ref, sup_ref, w2_ref, out_ref, acc_ref):
        k = pl.program_id(1)

        @pl.when(k == 0)
        def _():
            acc_ref[...] = jnp.zeros_like(acc_ref)

        koff = pl.multiple_of(k * k_tile, k_tile)
        acc_ref[...] += jnp.dot(
            adj_ref[...], sup_ref[pl.ds(koff, k_tile), :],
            preferred_element_type=jnp.float32)

        @pl.when(k == pl.num_programs(1) - 1)
        def _():
            # NOTE: lane width == hidden_dim (16) -> masked stores; acceptable
            # because the kernel is HBM-bound on the adj stream.
            h1 = jnp.maximum(acc_ref[...], 0.0).astype(jnp.bfloat16)
            out_ref[...] = jnp.dot(
                h1, w2_ref[...], preferred_element_type=jnp.float32
            ).astype(out_ref.dtype)

    return pl.pallas_call(
        kernel,
        out_shape=jax.ShapeDtypeStruct((n_pad, h), jnp.bfloat16),
        grid_spec=pltpu.PrefetchScalarGridSpec(
            num_scalar_prefetch=0,
            grid=(n_rows, nk),
            in_specs=[
                pl.BlockSpec((row_tile, k_tile), lambda i, k: (i, k)),
                pl.BlockSpec((n_pad, h), lambda i, k: (0, 0)),  # resident
                pl.BlockSpec((h, h), lambda i, k: (0, 0)),
            ],
            out_specs=pl.BlockSpec((row_tile, h), lambda i, k: (i, 0)),
            scratch_shapes=[pltpu.VMEM((row_tile, h), jnp.float32)],
        ),
        compiler_params=pltpu.CompilerParams(
            dimension_semantics=("parallel", "arbitrary"),
            vmem_limit_bytes=vmem,
        ),
    )(adjp, sup1, w2)


# --------------------------------------------------------------------------
# Layer 2 (fused classifier):  s = Wc @ relu(adj @ sup2)^T + b   -> (2, N)
#   s[0, n] = h2[n] @ Wc[:, :H] + bias ;  s[1, n] = h2[n] @ Wc[:, H:]
# --------------------------------------------------------------------------
def adj_layer_fused_classifier(adjp, sup2, wc2, bvec, row_tile, k_tile):
    n_pad = adjp.shape[0]
    h = sup2.shape[1]
    n_rows = n_pad // row_tile
    nk = n_pad // k_tile

    vmem = _vmem_limit_bytes(
        2 * row_tile * k_tile * 2,  # adj tile, double-buffered, bf16
        2 * n_pad * h * 2,          # resident support (budget 2 buffers)
        2 * 2 * h * 2,              # classifier weights
        2 * 2 * 1 * 4,              # bias
        2 * 2 * row_tile * 4,       # (2, tile) f32 out, double-buffered
        row_tile * h * 4,           # f32 accumulator scratch
    )

    def classifier_epilogue(acc_f32, wc_ref, b_ref):
        h2 = jnp.maximum(acc_f32, 0.0).astype(jnp.bfloat16)
        s = jax.lax.dot_general(
            wc_ref[...], h2,
            dimension_numbers=(((1,), (1,)), ((), ())),  # contract hidden dim
            preferred_element_type=jnp.float32,
        )  # (2, row_tile) lane-dense
        return s + b_ref[...]

    if nk == 1:
        def kernel(adj_ref, sup_ref, wc_ref, b_ref, out_ref):
            acc = jnp.dot(adj_ref[...], sup_ref[...],
                          preferred_element_type=jnp.float32)
            out_ref[...] = classifier_epilogue(acc, wc_ref, b_ref)

        return pl.pallas_call(
            kernel,
            out_shape=jax.ShapeDtypeStruct((2, n_pad), jnp.float32),
            grid_spec=pltpu.PrefetchScalarGridSpec(
                num_scalar_prefetch=0,
                grid=(n_rows,),
                in_specs=[
                    pl.BlockSpec((row_tile, k_tile), lambda i: (i, 0)),
                    pl.BlockSpec((n_pad, h), lambda i: (0, 0)),
                    pl.BlockSpec((2, h), lambda i: (0, 0)),
                    pl.BlockSpec((2, 1), lambda i: (0, 0)),
                ],
                out_specs=pl.BlockSpec((2, row_tile), lambda i: (0, i)),
            ),
            compiler_params=pltpu.CompilerParams(
                dimension_semantics=("parallel",),
                vmem_limit_bytes=vmem,
            ),
        )(adjp, sup2, wc2, bvec)

    def kernel(adj_ref, sup_ref, wc_ref, b_ref, out_ref, acc_ref):
        k = pl.program_id(1)

        @pl.when(k == 0)
        def _():
            acc_ref[...] = jnp.zeros_like(acc_ref)

        koff = pl.multiple_of(k * k_tile, k_tile)
        acc_ref[...] += jnp.dot(
            adj_ref[...], sup_ref[pl.ds(koff, k_tile), :],
            preferred_element_type=jnp.float32)

        @pl.when(k == pl.num_programs(1) - 1)
        def _():
            out_ref[...] = classifier_epilogue(acc_ref[...], wc_ref, b_ref)

    return pl.pallas_call(
        kernel,
        out_shape=jax.ShapeDtypeStruct((2, n_pad), jnp.float32),
        grid_spec=pltpu.PrefetchScalarGridSpec(
            num_scalar_prefetch=0,
            grid=(n_rows, nk),
            in_specs=[
                pl.BlockSpec((row_tile, k_tile), lambda i, k: (i, k)),
                pl.BlockSpec((n_pad, h), lambda i, k: (0, 0)),  # resident
                pl.BlockSpec((2, h), lambda i, k: (0, 0)),
                pl.BlockSpec((2, 1), lambda i, k: (0, 0)),
            ],
            out_specs=pl.BlockSpec((2, row_tile), lambda i, k: (0, i)),
            scratch_shapes=[pltpu.VMEM((row_tile, h), jnp.float32)],
        ),
        compiler_params=pltpu.CompilerParams(
            dimension_semantics=("parallel", "arbitrary"),
            vmem_limit_bytes=vmem,
        ),
    )(adjp, sup2, wc2, bvec)


# --------------------------------------------------------------------------
# Forward pass matching GCNLinkPredictor.forward (eval mode)
# --------------------------------------------------------------------------
def prepare_graph(x, adj_norm):
    """One-time pad + bf16 cast (hoisted out of the per-forward path)."""
    n = x.shape[0]
    n_pad, row_tile, k_tile = _pad_and_tiles(n)
    xp = jnp.pad(x, ((0, n_pad - n), (0, 0))).astype(jnp.bfloat16)
    adjp = jnp.pad(adj_norm, ((0, n_pad - n), (0, n_pad - n))).astype(jnp.bfloat16)
    return xp, adjp, (n_pad, row_tile, k_tile)


def gcn_link_predictor(params, xp, adjp, edge_pairs, tiles):
    n_pad, row_tile, k_tile = tiles
    ft_tile = min(n_pad, 1024)

    w1 = params["w1"].astype(jnp.bfloat16)
    w2 = params["w2"].astype(jnp.bfloat16)
    wc2 = params["wc2"].astype(jnp.bfloat16)
    bvec = params["bvec"]  # f32 (2, 1), row 0 carries the classifier bias

    # gc1 + gc2 support fused:  sup2 = relu(adj @ (x @ W1)) @ W2
    sup1 = feature_matmul(xp, w1, ft_tile)
    # dropout(p=0.1) in eval mode -> identity (applied between relu and @W2)
    sup2 = adj_layer_fused_w2(adjp, sup1, w2, row_tile, k_tile)

    # gc2 + classifier fused:  s = Wc @ relu(adj @ sup2)^T + b   (2, N)
    s = adj_layer_fused_classifier(adjp, sup2, wc2, bvec, row_tile, k_tile)

    # per-edge logit = s[0, u] + s[1, v]   (only E scalar gathers; the
    # E x 2H feature gather of the original formulation is eliminated)
    u = edge_pairs[:, 0]
    v = edge_pairs[:, 1]
    logits = s[0, u] + s[1, v]
    return logits  # [num_edges], matches .squeeze() for num_edges > 1


# --------------------------------------------------------------------------
# Deterministic parameter init (matches module shapes)
# --------------------------------------------------------------------------
def init_params(key, num_features, hidden_dim):
    k1, k2, k3, k4 = jax.random.split(key, 4)

    def xavier_uniform(k, shape):
        fan_in, fan_out = shape
        bound = math.sqrt(6.0 / (fan_in + fan_out))
        return jax.random.uniform(k, shape, jnp.float32, -bound, bound)

    # GraphConv weights (no bias in the reference GraphConv)
    w1 = xavier_uniform(k1, (num_features, hidden_dim))
    w2 = xavier_uniform(k2, (hidden_dim, hidden_dim))

    # nn.Linear(2*hidden_dim, 1): weight (1, 2H), bias (1,)
    fan_in = 2 * hidden_dim
    bound = 1.0 / math.sqrt(fan_in)
    wc = jax.random.uniform(k3, (1, 2 * hidden_dim), jnp.float32, -bound, bound)
    bc = jax.random.uniform(k4, (1,), jnp.float32, -bound, bound)

    # split classifier weight:  cat([h_u, h_v]) @ W.T + b
    #                         == h_u @ W[:, :H].T + h_v @ W[:, H:].T + b
    wc2 = jnp.concatenate([wc[:, :hidden_dim], wc[:, hidden_dim:]], axis=0)  # (2, H)
    bvec = jnp.concatenate(
        [bc.reshape(1, 1), jnp.zeros((1, 1), jnp.float32)], axis=0
    )  # (2, 1): bias folded into the "u" score row

    return {"w1": w1, "w2": w2, "wc2": wc2, "bvec": bvec}


# --------------------------------------------------------------------------
if __name__ == "__main__":
    key = jax.random.PRNGKey(0)
    k_param, k_x, k_adj, k_edges = jax.random.split(key, 4)

    num_nodes = 32
    num_features = 8
    hidden_dim = 16
    num_edges = 12

    params = init_params(k_param, num_features, hidden_dim)

    # node features
    x = jax.random.normal(k_x, (num_nodes, num_features), jnp.float32)

    # symmetric-normalized adjacency with self loops: D^-1/2 (A+I) D^-1/2
    a_rand = jax.random.uniform(k_adj, (num_nodes, num_nodes), jnp.float32)
    a = (a_rand > 0.8).astype(jnp.float32)
    a = jnp.maximum(a, a.T)
    a = a + jnp.eye(num_nodes, dtype=jnp.float32)
    deg = jnp.sum(a, axis=1)
    d_inv_sqrt = 1.0 / jnp.sqrt(deg)
    adj_norm = a * d_inv_sqrt[:, None] * d_inv_sqrt[None, :]

    # edge pairs to score
    edge_pairs = jax.random.randint(k_edges, (num_edges, 2), 0, num_nodes, jnp.int32)

    # pad / cast once (static across forward calls), then run the forward
    xp, adjp, tiles = prepare_graph(x, adj_norm)
    forward = jax.jit(gcn_link_predictor, static_argnums=(4,))
    logits = forward(params, xp, adjp, edge_pairs, tiles)
    logits = jax.block_until_ready(logits)

    assert logits.shape == (num_edges,)
    assert logits.dtype == jnp.float32
    print("KERNEL_OK")
</pallas_src>

<mosaic_0001>
module attributes {stable_mosaic.version = 11 : i64} {
  func.func @_feature_matmul_kernel(%arg0: i32, %arg1: memref<128x8xbf16, #tpu.memory_space<vmem>>, %arg2: memref<8x16xbf16, #tpu.memory_space<vmem>>, %arg3: memref<128x16xbf16, #tpu.memory_space<vmem>>) attributes {dimension_semantics = [#tpu.dimension_semantics<parallel>], iteration_bounds = array<i64: 1>, scalar_prefetch = 0 : i64, scratch_operands = 0 : i64, tpu.core_type = #tpu.core_type<tc>, window_params = [{transform_indices = @transform_0, window_bounds = array<i64: 128, 8>}, {pipeline_mode = #tpu.pipeline_mode<synchronous>, transform_indices = @transform_1, window_bounds = array<i64: 8, 16>}, {transform_indices = @transform_2, window_bounds = array<i64: 128, 16>}]} {
    %c0 = arith.constant 0 : index
    %c0_0 = arith.constant 0 : index
    %0 = vector.load %arg1[%c0, %c0_0] : memref<128x8xbf16, #tpu.memory_space<vmem>>, vector<128x8xbf16>
    %c0_1 = arith.constant 0 : index
    %c0_2 = arith.constant 0 : index
    %1 = vector.load %arg2[%c0_1, %c0_2] : memref<8x16xbf16, #tpu.memory_space<vmem>>, vector<8x16xbf16>
    %cst = arith.constant dense<0.000000e+00> : vector<128x16xf32>
    %2 = tpu.matmul %0, %1, %cst {dimension_numbers = #tpu.dot_dimension_numbers<[1], [0], [0], [1], [0, 0, 1, 1], [], []>} : vector<128x8xbf16>, vector<8x16xbf16>, vector<128x16xf32> -> vector<128x16xf32>
    %3 = arith.truncf %2 : vector<128x16xf32> to vector<128x16xbf16>
    %c0_3 = arith.constant 0 : index
    %c0_4 = arith.constant 0 : index
    %4 = vector.load %arg3[%c0_3, %c0_4] : memref<128x16xbf16, #tpu.memory_space<vmem>>, vector<128x16xbf16>
    tpu.vector_store %arg3[%c0_3, %c0_4], %3 {strides = array<i32>} : memref<128x16xbf16, #tpu.memory_space<vmem>>, vector<128x16xbf16>,
    return
  }
  func.func @transform_0(%arg0: i32) -> (i32, i32) {
    %c0_i32 = arith.constant 0 : i32
    %c0_i32_0 = arith.constant 0 : i32
    return %arg0, %c0_i32 : i32, i32
  }
  func.func @transform_1(%arg0: i32) -> (i32, i32) {
    %c0_i32 = arith.constant 0 : i32
    %c0_i32_0 = arith.constant 0 : i32
    %c0_i32_1 = arith.constant 0 : i32
    return %c0_i32, %c0_i32_0 : i32, i32
  }
  func.func @transform_2(%arg0: i32) -> (i32, i32) {
    %c0_i32 = arith.constant 0 : i32
    %c0_i32_0 = arith.constant 0 : i32
    return %arg0, %c0_i32 : i32, i32
  }
}

module attributes {stable_mosaic.version = 11 : i64} {
  func.func @kernel(%arg0: i32, %arg1: memref<128x128xbf16, #tpu.memory_space<vmem>>, %arg2: memref<128x16xbf16, #tpu.memory_space<vmem>>, %arg3: memref<16x16xbf16, #tpu.memory_space<vmem>>, %arg4: memref<128x16xbf16, #tpu.memory_space<vmem>>) attributes {dimension_semantics = [#tpu.dimension_semantics<parallel>], iteration_bounds = array<i64: 1>, scalar_prefetch = 0 : i64, scratch_operands = 0 : i64, tpu.core_type = #tpu.core_type<tc>, window_params = [{transform_indices = @transform_0, window_bounds = array<i64: 128, 128>}, {pipeline_mode = #tpu.pipeline_mode<synchronous>, transform_indices = @transform_1, window_bounds = array<i64: 128, 16>}, {pipeline_mode = #tpu.pipeline_mode<synchronous>, transform_indices = @transform_2, window_bounds = array<i64: 16, 16>}, {transform_indices = @transform_3, window_bounds = array<i64: 128, 16>}]} {
    %c0 = arith.constant 0 : index
    %c0_0 = arith.constant 0 : index
    %0 = vector.load %arg1[%c0, %c0_0] : memref<128x128xbf16, #tpu.memory_space<vmem>>, vector<128x128xbf16>
    %c0_1 = arith.constant 0 : index
    %c0_2 = arith.constant 0 : index
    %1 = vector.load %arg2[%c0_1, %c0_2] : memref<128x16xbf16, #tpu.memory_space<vmem>>, vector<128x16xbf16>
    %cst = arith.constant dense<0.000000e+00> : vector<128x16xf32>
    %2 = tpu.matmul %0, %1, %cst {dimension_numbers = #tpu.dot_dimension_numbers<[1], [0], [0], [1], [0, 0, 1, 1], [], []>} : vector<128x128xbf16>, vector<128x16xbf16>, vector<128x16xf32> -> vector<128x16xf32>
    %cst_3 = arith.constant 0.000000e+00 : f32
    %3 = vector.broadcast %cst_3 : f32 to vector<128x16xf32>
    %4 = arith.maximumf %2, %3 : vector<128x16xf32>
    %5 = arith.truncf %4 : vector<128x16xf32> to vector<128x16xbf16>
    %c0_4 = arith.constant 0 : index
    %c0_5 = arith.constant 0 : index
    %6 = vector.load %arg3[%c0_4, %c0_5] : memref<16x16xbf16, #tpu.memory_space<vmem>>, vector<16x16xbf16>
    %cst_6 = arith.constant dense<0.000000e+00> : vector<128x16xf32>
    %7 = tpu.matmul %5, %6, %cst_6 {dimension_numbers = #tpu.dot_dimension_numbers<[1], [0], [0], [1], [0, 0, 1, 1], [], []>} : vector<128x16xbf16>, vector<16x16xbf16>, vector<128x16xf32> -> vector<128x16xf32>
    %8 = arith.truncf %7 : vector<128x16xf32> to vector<128x16xbf16>
    %c0_7 = arith.constant 0 : index
    %c0_8 = arith.constant 0 : index
    %9 = vector.load %arg4[%c0_7, %c0_8] : memref<128x16xbf16, #tpu.memory_space<vmem>>, vector<128x16xbf16>
    tpu.vector_store %arg4[%c0_7, %c0_8], %8 {strides = array<i32>} : memref<128x16xbf16, #tpu.memory_space<vmem>>, vector<128x16xbf16>,
    return
  }
  func.func @transform_0(%arg0: i32) -> (i32, i32) {
    %c0_i32 = arith.constant 0 : i32
    %c0_i32_0 = arith.constant 0 : i32
    return %arg0, %c0_i32 : i32, i32
  }
  func.func @transform_1(%arg0: i32) -> (i32, i32) {
    %c0_i32 = arith.constant 0 : i32
    %c0_i32_0 = arith.constant 0 : i32
    %c0_i32_1 = arith.constant 0 : i32
    return %c0_i32, %c0_i32_0 : i32, i32
  }
  func.func @transform_2(%arg0: i32) -> (i32, i32) {
    %c0_i32 = arith.constant 0 : i32
    %c0_i32_0 = arith.constant 0 : i32
    %c0_i32_1 = arith.constant 0 : i32
    return %c0_i32, %c0_i32_0 : i32, i32
  }
  func.func @transform_3(%arg0: i32) -> (i32, i32) {
    %c0_i32 = arith.constant 0 : i32
    %c0_i32_0 = arith.constant 0 : i32
    return %arg0, %c0_i32 : i32, i32
  }
}

module attributes {stable_mosaic.version = 11 : i64} {
  func.func @kernel(%arg0: i32, %arg1: memref<128x128xbf16, #tpu.memory_space<vmem>>, %arg2: memref<128x16xbf16, #tpu.memory_space<vmem>>, %arg3: memref<2x16xbf16, #tpu.memory_space<vmem>>, %arg4: memref<2x1xf32, #tpu.memory_space<vmem>>, %arg5: memref<2x128xf32, #tpu.memory_space<vmem>>) attributes {dimension_semantics = [#tpu.dimension_semantics<parallel>], iteration_bounds = array<i64: 1>, scalar_prefetch = 0 : i64, scratch_operands = 0 : i64, tpu.core_type = #tpu.core_type<tc>, window_params = [{transform_indices = @transform_0, window_bounds = array<i64: 128, 128>}, {pipeline_mode = #tpu.pipeline_mode<synchronous>, transform_indices = @transform_1, window_bounds = array<i64: 128, 16>}, {pipeline_mode = #tpu.pipeline_mode<synchronous>, transform_indices = @transform_2, window_bounds = array<i64: 2, 16>}, {pipeline_mode = #tpu.pipeline_mode<synchronous>, transform_indices = @transform_3, window_bounds = array<i64: 2, 1>}, {transform_indices = @transform_4, window_bounds = array<i64: 2, 128>}]} {
    %c0 = arith.constant 0 : index
    %c0_0 = arith.constant 0 : index
    %0 = vector.load %arg1[%c0, %c0_0] : memref<128x128xbf16, #tpu.memory_space<vmem>>, vector<128x128xbf16>
    %c0_1 = arith.constant 0 : index
    %c0_2 = arith.constant 0 : index
    %1 = vector.load %arg2[%c0_1, %c0_2] : memref<128x16xbf16, #tpu.memory_space<vmem>>, vector<128x16xbf16>
    %cst = arith.constant dense<0.000000e+00> : vector<128x16xf32>
    %2 = tpu.matmul %0, %1, %cst {dimension_numbers = #tpu.dot_dimension_numbers<[1], [0], [0], [1], [0, 0, 1, 1], [], []>} : vector<128x128xbf16>, vector<128x16xbf16>, vector<128x16xf32> -> vector<128x16xf32>
    %cst_3 = arith.constant 0.000000e+00 : f32
    %3 = vector.broadcast %cst_3 : f32 to vector<128x16xf32>
    %4 = arith.maximumf %2, %3 : vector<128x16xf32>
    %5 = arith.truncf %4 : vector<128x16xf32> to vector<128x16xbf16>
    %c0_4 = arith.constant 0 : index
    %c0_5 = arith.constant 0 : index
    %6 = vector.load %arg3[%c0_4, %c0_5] : memref<2x16xbf16, #tpu.memory_space<vmem>>, vector<2x16xbf16>
    %cst_6 = arith.constant dense<0.000000e+00> : vector<2x128xf32>
    %7 = tpu.matmul %6, %5, %cst_6 {dimension_numbers = #tpu.dot_dimension_numbers<[1], [1], [0], [0], [0, 0, 1, 0], [], []>} : vector<2x16xbf16>, vector<128x16xbf16>, vector<2x128xf32> -> vector<2x128xf32>
    %c0_7 = arith.constant 0 : index
    %c0_8 = arith.constant 0 : index
    %8 = vector.load %arg4[%c0_7, %c0_8] : memref<2x1xf32, #tpu.memory_space<vmem>>, vector<2x1xf32>
    %9 = vector.broadcast %8 : vector<2x1xf32> to vector<2x128xf32>
    %10 = arith.addf %7, %9 : vector<2x128xf32>
    %c0_9 = arith.constant 0 : index
    %c0_10 = arith.constant 0 : index
    %11 = vector.load %arg5[%c0_9, %c0_10] : memref<2x128xf32, #tpu.memory_space<vmem>>, vector<2x128xf32>
    tpu.vector_store %arg5[%c0_9, %c0_10], %10 {strides = array<i32>} : memref<2x128xf32, #tpu.memory_space<vmem>>, vector<2x128xf32>,
    return
  }
  func.func @transform_0(%arg0: i32) -> (i32, i32) {
    %c0_i32 = arith.constant 0 : i32
    %c0_i32_0 = arith.constant 0 : i32
    return %arg0, %c0_i32 : i32, i32
  }
  func.func @transform_1(%arg0: i32) -> (i32, i32) {
    %c0_i32 = arith.constant 0 : i32
    %c0_i32_0 = arith.constant 0 : i32
    %c0_i32_1 = arith.constant 0 : i32
    return %c0_i32, %c0_i32_0 : i32, i32
  }
  func.func @transform_2(%arg0: i32) -> (i32, i32) {
    %c0_i32 = arith.constant 0 : i32
    %c0_i32_0 = arith.constant 0 : i32
    %c0_i32_1 = arith.constant 0 : i32
    return %c0_i32, %c0_i32_0 : i32, i32
  }
  func.func @transform_3(%arg0: i32) -> (i32, i32) {
    %c0_i32 = arith.constant 0 : i32
    %c0_i32_0 = arith.constant 0 : i32
    %c0_i32_1 = arith.constant 0 : i32
    return %c0_i32, %c0_i32_0 : i32, i32
  }
  func.func @transform_4(%arg0: i32) -> (i32, i32) {
    %c0_i32 = arith.constant 0 : i32
    %c0_i32_0 = arith.constant 0 : i32
    return %c0_i32, %arg0 : i32, i32
  }
}

</mosaic_0001>

<bundles_post_ra>
// kernel: gcn_link_predictor.4
= control target key start
LH: loop header
LB: loop body
LE: loop exit
PB: predicated region body
PF: predicated region fallthrough
CT: control target
= control target key end

     0   :  { %vm224_vm0 = vcmask 130048   ;;  %vm314_vm1 = vcmask 125952   ;;  %s580_s1 = inlined_call_operand.vmem [shape: bf16[128,16], index: 1, kind: input, shape index: {}]   ;;  %s581_s0 = inlined_call_operand.vmem [shape: bf16[128,128], index: 0, kind: input, shape index: {}]   ;;  %s582_s2 = inlined_call_operand.vmem [shape: bf16[16,16], index: 2, kind: input, shape index: {}]   ;;  %s583_s3 = inlined_call_operand.vmem [shape: bf16[128,16], index: 3, kind: output, shape index: {}]  }
   0x1   :  { %v426_v0 = vld [vmem:[%s580_s1 + $0x38] sm:$0xff]  ;;  %v425_v1 = vld [vmem:[%s580_s1 + $0x30] sm:$0xff]  ;;  %v424_v2 = vld [vmem:[%s580_s1 + $0x28] sm:$0xff] }
   0x2   :  { %143 = vmatpush.bf16.msra.mxu0 %v426_v0  ;;  %428 = vmatpush.bf16.msra.mxu2 %v426_v0  ;;  %v423_v3 = vld [vmem:[%s580_s1 + $0x20] sm:$0xff]  ;;  %v422_v4 = vld [vmem:[%s580_s1 + $0x18] sm:$0xff]  ;;  %v421_v5 = vld [vmem:[%s580_s1 + $0x10] sm:$0xff] }
   0x3   :  { %v420_v6 = vld [vmem:[%s580_s1 + $0x8] sm:$0xff]  ;;  %v419_v7 = vld [vmem:[%s580_s1] sm:$0xff]  ;;  %v413_v12 = vld [vmem:[%s581_s0 + $0x10] sm:$0xff] }
   0x4   :  { %v411_v8 = vld [vmem:[%s581_s0] sm:$0xff]  ;;  %v412_v10 = vld [vmem:[%s581_s0 + $0x8] sm:$0xff]  ;;  %v417_v13 = vld [vmem:[%s581_s0 + $0x30] sm:$0xff] }
   0x5   :  { %v415_v9 = vld [vmem:[%s581_s0 + $0x20] sm:$0xff]  ;;  %v416_v11 = vld [vmem:[%s581_s0 + $0x28] sm:$0xff]  ;;  %v414_v14 = vld [vmem:[%s581_s0 + $0x18] sm:$0xff] }
   0x6   :  { %144 = vmatpush.bf16.msra.mxu0 %v425_v1  ;;  %429 = vmatpush.bf16.msra.mxu2 %v425_v1  ;;  %v418_v15 = vld [vmem:[%s581_s0 + $0x38] sm:$0xff]  ;;  %v427_v16 = vld [vmem:[%s582_s2] sm:$0xff] }
   0x7   :  { %256 = vmatpush.bf16.msra.mxu1 %v427_v16  ;;  %436 = vmatpush.bf16.msra.mxu3 %v427_v16 }
   0xa   :  { %145 = vmatpush.bf16.msra.mxu0 %v424_v2  ;;  %430 = vmatpush.bf16.msra.mxu2 %v424_v2 }
   0xe   :  { %146 = vmatpush.bf16.msra.mxu0 %v423_v3  ;;  %431 = vmatpush.bf16.msra.mxu2 %v423_v3 }
  0x12   :  { %147 = vmatpush.bf16.msra.mxu0 %v422_v4  ;;  %432 = vmatpush.bf16.msra.mxu2 %v422_v4 }
  0x16   :  { %148 = vmatpush.bf16.msra.mxu0 %v421_v5  ;;  %433 = vmatpush.bf16.msra.mxu2 %v421_v5 }
  0x1a   :  { %149 = vmatpush.bf16.msra.mxu0 %v420_v6  ;;  %434 = vmatpush.bf16.msra.mxu2 %v420_v6 }
  0x1e   :  { %150 = vmatpush.bf16.msra.mxu0 %v419_v7  ;;  %435 = vmatpush.bf16.msra.mxu2 %v419_v7 }
  0x21   :  { %151 = vmatmul.bf16.vlgmr.msra.gmra.mxu0 %v411_v8  ;;  %171 = vmatmul.bf16.vlgmr.msra.gmra.mxu2 %v415_v9 }
  0x31   :  { %156 = vmatmul.bf16.gmra.mxu0 %v412_v10  ;;  %176 = vmatmul.bf16.gmra.mxu2 %v416_v11 }
  0x41   :  { %161 = vmatmul.bf16.gmra.mxu0 %v413_v12  ;;  %181 = vmatmul.bf16.gmra.mxu2 %v417_v13 }
  0x51   :  { %166 = vmatmul.bf16.gmra.mxu0 %v414_v14  ;;  %186 = vmatmul.bf16.gmra.mxu2 %v418_v15 }
  0x9e   :  { %v152_v17 = vpop.f32.mrf.mxu0 }
  0x9f   :  { %v192_v20 = vmax.f32 %v152_v17, 0.0 }
  0xa4   :  { %v172_v18 = vpop.f32.mrf.mxu2 }
  0xa5   :  { %v200_v55 = vmax.f32 %v172_v18, 0.0 }
  0xa6   :  { %v154_v19 = vpop.f32.mrf.mxu0 }
  0xa7   :  { %v193_v21 = vmax.f32 %v154_v19, 0.0 }
  0xa9   :  { %v208_v22 = vpack.c.bf16 %v193_v21, %v192_v20 }
  0xab   :  { %403 = vmatmul.msk.bf16.vlgmr.msra.gmra.mxu1 %vm224_vm0, %v208_v22 }
  0xac   :  { %v174_v23 = vpop.f32.mrf.mxu2 }
  0xad   :  { %v201_v54 = vmax.f32 %v174_v23, 0.0 }
  0xae   :  { %v157_v24 = vpop.f32.mrf.mxu0 }
  0xaf   :  { %v194_v27 = vmax.f32 %v157_v24, 0.0  ;;  %v212_v56 = vpack.c.bf16 %v201_v54, %v200_v55 }
  0xb4   :  { %v177_v25 = vpop.f32.mrf.mxu2 }
  0xb5   :  { %v202_v31 = vmax.f32 %v177_v25, 0.0 }
  0xb6   :  { %v159_v26 = vpop.f32.mrf.mxu0 }
  0xb7   :  { %v195_v28 = vmax.f32 %v159_v26, 0.0 }
  0xb9   :  { %v209_v29 = vpack.c.bf16 %v195_v28, %v194_v27 }
  0xbb   :  { %404 = vmatmul.msk.bf16.gmra.mxu1 %vm224_vm0, %v209_v29 }
  0xbc   :  { %v179_v30 = vpop.f32.mrf.mxu2 }
  0xbd   :  { %v203_v32 = vmax.f32 %v179_v30, 0.0 }
  0xbe   :  { %v162_v33 = vpop.f32.mrf.mxu0 }
  0xbf   :  { %v213_v34 = vpack.c.bf16 %v203_v32, %v202_v31  ;;  %v196_v37 = vmax.f32 %v162_v33, 0.0 }
  0xc1   :  { %408 = vmatmul.msk.bf16.vlgmr.msra.gmra.mxu3 %vm224_vm0, %v213_v34 }
  0xc4   :  { %v182_v35 = vpop.f32.mrf.mxu2 }
  0xc5   :  { %v204_v41 = vmax.f32 %v182_v35, 0.0 }
  0xc6   :  { %v164_v36 = vpop.f32.mrf.mxu0 }
  0xc7   :  { %v197_v38 = vmax.f32 %v164_v36, 0.0 }
  0xc9   :  { %v210_v39 = vpack.c.bf16 %v197_v38, %v196_v37 }
  0xcb   :  { %405 = vmatmul.msk.bf16.gmra.mxu1 %vm224_vm0, %v210_v39 }
  0xcc   :  { %v184_v40 = vpop.f32.mrf.mxu2 }
  0xcd   :  { %v205_v42 = vmax.f32 %v184_v40, 0.0 }
  0xce   :  { %v167_v43 = vpop.f32.mrf.mxu0 }
  0xcf   :  { %v214_v44 = vpack.c.bf16 %v205_v42, %v204_v41  ;;  %v198_v47 = vmax.f32 %v167_v43, 0.0 }
  0xd1   :  { %409 = vmatmul.msk.bf16.gmra.mxu3 %vm224_vm0, %v214_v44 }
  0xd4   :  { %v187_v45 = vpop.f32.mrf.mxu2 }
  0xd5   :  { %v206_v51 = vmax.f32 %v187_v45, 0.0 }
  0xd6   :  { %v169_v46 = vpop.f32.mrf.mxu0 }
  0xd7   :  { %v199_v48 = vmax.f32 %v169_v46, 0.0 }
  0xd9   :  { %v211_v49 = vpack.c.bf16 %v199_v48, %v198_v47 }
  0xdb   :  { %406 = vmatmul.msk.bf16.gmra.mxu1 %vm224_vm0, %v211_v49 }
  0xdc   :  { %v189_v50 = vpop.f32.mrf.mxu2 }
  0xdd   :  { %v207_v52 = vmax.f32 %v189_v50, 0.0 }
  0xdf   :  { %v215_v53 = vpack.c.bf16 %v207_v52, %v206_v51 }
  0xe1   :  { %410 = vmatmul.msk.bf16.gmra.mxu3 %vm224_vm0, %v215_v53 }
  0xeb   :  { %407 = vmatmul.msk.bf16.gmra.mxu1 %vm224_vm0, %v212_v56 }
 0x128   :  { %v258_v57 = vpop.f32.mrf.mxu1 }
 0x129   :  { %v298_v58 = vpack.c.bf16 %v258_v57, %v258_v57 }
 0x12b   :  { %315 = vst.msk [vmem:[%s583_s3] sm:$0xf] %vm314_vm1, %v298_v58 }
 0x130   :  { %v260_v59 = vpop.f32.mrf.mxu1 }
 0x131   :  { %v299_v60 = vpack.c.bf16 %v260_v59, %v260_v59 }
 0x133   :  { %316 = vst.msk [vmem:[%s583_s3 + $0x4] sm:$0xf] %vm314_vm1, %v299_v60 }
 0x138   :  { %v263_v61 = vpop.f32.mrf.mxu1 }
 0x139   :  { %v300_v62 = vpack.c.bf16 %v263_v61, %v263_v61 }
 0x13b   :  { %317 = vst.msk [vmem:[%s583_s3 + $0x8] sm:$0xf] %vm314_vm1, %v300_v62 }
 0x140   :  { %v265_v63 = vpop.f32.mrf.mxu1 }
 0x141   :  { %v301_v0 = vpack.c.bf16 %v265_v63, %v265_v63 }
 0x143   :  { %318 = vst.msk [vmem:[%s583_s3 + $0xc] sm:$0xf] %vm314_vm1, %v301_v0 }
 0x144   :  { %v283_v1 = vpop.f32.mrf.mxu3 }
 0x145   :  { %v308_v2 = vpack.c.bf16 %v283_v1, %v283_v1 }
 0x147   :  { %325 = vst.msk [vmem:[%s583_s3 + $0x28] sm:$0xf] %vm314_vm1, %v308_v2 }
 0x148   :  { %v268_v3 = vpop.f32.mrf.mxu1 }
 0x149   :  { %v302_v4 = vpack.c.bf16 %v268_v3, %v268_v3 }
 0x14b   :  { %319 = vst.msk [vmem:[%s583_s3 + $0x10] sm:$0xf] %vm314_vm1, %v302_v4 }
 0x14c   :  { %v285_v5 = vpop.f32.mrf.mxu3 }
 0x14d   :  { %v309_v6 = vpack.c.bf16 %v285_v5, %v285_v5 }
 0x14f   :  { %326 = vst.msk [vmem:[%s583_s3 + $0x2c] sm:$0xf] %vm314_vm1, %v309_v6 }
 0x150   :  { %v270_v7 = vpop.f32.mrf.mxu1 }
 0x151   :  { %v303_v8 = vpack.c.bf16 %v270_v7, %v270_v7 }
 0x153   :  { %320 = vst.msk [vmem:[%s583_s3 + $0x14] sm:$0xf] %vm314_vm1, %v303_v8 }
 0x154   :  { %v288_v9 = vpop.f32.mrf.mxu3 }
 0x155   :  { %v310_v10 = vpack.c.bf16 %v288_v9, %v288_v9 }
 0x157   :  { %327 = vst.msk [vmem:[%s583_s3 + $0x30] sm:$0xf] %vm314_vm1, %v310_v10 }
 0x158   :  { %v273_v11 = vpop.f32.mrf.mxu1 }
 0x159   :  { %v304_v12 = vpack.c.bf16 %v273_v11, %v273_v11 }
 0x15b   :  { %321 = vst.msk [vmem:[%s583_s3 + $0x18] sm:$0xf] %vm314_vm1, %v304_v12 }
 0x15c   :  { %v290_v13 = vpop.f32.mrf.mxu3 }
 0x15d   :  { %v311_v14 = vpack.c.bf16 %v290_v13, %v290_v13 }
 0x15f   :  { %328 = vst.msk [vmem:[%s583_s3 + $0x34] sm:$0xf] %vm314_vm1, %v311_v14 }
 0x160   :  { %v275_v15 = vpop.f32.mrf.mxu1 }
 0x161   :  { %v305_v16 = vpack.c.bf16 %v275_v15, %v275_v15 }
 0x163   :  { %322 = vst.msk [vmem:[%s583_s3 + $0x1c] sm:$0xf] %vm314_vm1, %v305_v16 }
 0x164   :  { %v293_v17 = vpop.f32.mrf.mxu3 }
 0x165   :  { %v312_v18 = vpack.c.bf16 %v293_v17, %v293_v17 }
 0x167   :  { %329 = vst.msk [vmem:[%s583_s3 + $0x38] sm:$0xf] %vm314_vm1, %v312_v18 }
 0x168   :  { %v278_v19 = vpop.f32.mrf.mxu1 }
 0x169   :  { %v306_v20 = vpack.c.bf16 %v278_v19, %v278_v19 }
 0x16b   :  { %323 = vst.msk [vmem:[%s583_s3 + $0x20] sm:$0xf] %vm314_vm1, %v306_v20 }
 0x16c   :  { %v295_v21 = vpop.f32.mrf.mxu3 }
 0x16d   :  { %v313_v22 = vpack.c.bf16 %v295_v21, %v295_v21 }
 0x16f   :  { %330 = vst.msk [vmem:[%s583_s3 + $0x3c] sm:$0xf] %vm314_vm1, %v313_v22 }
 0x170   :  { %v280_v23 = vpop.f32.mrf.mxu1 }
 0x171   :  { %v307_v24 = vpack.c.bf16 %v280_v23, %v280_v23 }
 0x173   :  { %324 = vst.msk [vmem:[%s583_s3 + $0x24] sm:$0xf] %vm314_vm1, %v307_v24 }

// kernel: gcn_link_predictor.3
= control target key start
LH: loop header
LB: loop body
LE: loop exit
PB: predicated region body
PF: predicated region fallthrough
CT: control target
= control target key end

     0   :  { %vm94_vm0 = vcmask 1043456   ;;  %vm69_vm1 = vcmask 64512   ;;  %vm163_vm2 = vcmask 125952   ;;  %s349_s1 = inlined_call_operand.vmem [shape: bf16[8,16], index: 1, kind: input, shape index: {}]   ;;  %s350_s0 = inlined_call_operand.vmem [shape: bf16[128,8], index: 0, kind: input, shape index: {}]   ;;  %s351_s2 = inlined_call_operand.vmem [shape: bf16[128,16], index: 2, kind: output, shape index: {}]  }
   0x1   :  { %v28_v0 = vld [vmem:[%s349_s1] sm:$0xf]  ;;  %v226_v3 = vld [vmem:[%s350_s0 + $0x10] sm:$0xff]  ;;  %v225_v6 = vld [vmem:[%s350_s0 + $0x8] sm:$0xff] }
   0x2   :  { %v96_v1 = vsel %vm94_vm0, %v28_v0, 0  ;;  %v224_v2 = vld [vmem:[%s350_s0] sm:$0xff]  ;;  %v230_v5 = vld [vmem:[%s350_s0 + $0x30] sm:$0xff]  ;;  %v227_v7 = vld [vmem:[%s350_s0 + $0x18] sm:$0xff] }
   0x3   :  { %105 = vmatpush.bf16.msra.mxu0 %v96_v1  ;;  %232 = vmatpush.bf16.msra.mxu1 %v96_v1  ;;  %v228_v4 = vld [vmem:[%s350_s0 + $0x20] sm:$0xff]  ;;  %v229_v8 = vld [vmem:[%s350_s0 + $0x28] sm:$0xff]  ;;  %v231_v9 = vld [vmem:[%s350_s0 + $0x38] sm:$0xff] }
   0x4   :  { %233 = vmatpush.bf16.msra.mxu2 %v96_v1  ;;  %234 = vmatpush.bf16.msra.mxu3 %v96_v1 }
   0x6   :  { %216 = vmatmul.msk.bf16.vlgmr.msra.gmra.mxu0 %vm69_vm1, %v224_v2  ;;  %218 = vmatmul.msk.bf16.vlgmr.msra.gmra.mxu1 %vm69_vm1, %v226_v3 }
   0x7   :  { %220 = vmatmul.msk.bf16.vlgmr.msra.gmra.mxu2 %vm69_vm1, %v228_v4  ;;  %222 = vmatmul.msk.bf16.vlgmr.msra.gmra.mxu3 %vm69_vm1, %v230_v5 }
  0x16   :  { %217 = vmatmul.msk.bf16.gmra.mxu0 %vm69_vm1, %v225_v6  ;;  %219 = vmatmul.msk.bf16.gmra.mxu1 %vm69_vm1, %v227_v7 }
  0x17   :  { %221 = vmatmul.msk.bf16.gmra.mxu2 %vm69_vm1, %v229_v8  ;;  %223 = vmatmul.msk.bf16.gmra.mxu3 %vm69_vm1, %v231_v9 }
  0x83   :  { %v107_v10 = vpop.f32.mrf.mxu0  ;;  %v117_v11 = vpop.f32.mrf.mxu1 }
  0x84   :  { %v147_v12 = vpack.c.bf16 %v107_v10, %v107_v10  ;;  %v151_v13 = vpack.c.bf16 %v117_v11, %v117_v11 }
  0x86   :  { %164 = vst.msk [vmem:[%s351_s2] sm:$0xf] %vm163_vm2, %v147_v12 }
  0x87   :  { %168 = vst.msk [vmem:[%s351_s2 + $0x10] sm:$0xf] %vm163_vm2, %v151_v13 }
  0x8a   :  { %v127_v14 = vpop.f32.mrf.mxu2  ;;  %v137_v15 = vpop.f32.mrf.mxu3 }
  0x8b   :  { %v155_v16 = vpack.c.bf16 %v127_v14, %v127_v14  ;;  %v159_v17 = vpack.c.bf16 %v137_v15, %v137_v15  ;;  %v109_v18 = vpop.f32.mrf.mxu0  ;;  %v119_v19 = vpop.f32.mrf.mxu1 }
  0x8c   :  { %v148_v20 = vpack.c.bf16 %v109_v18, %v109_v18  ;;  %v152_v21 = vpack.c.bf16 %v119_v19, %v119_v19 }
  0x8d   :  { %172 = vst.msk [vmem:[%s351_s2 + $0x20] sm:$0xf] %vm163_vm2, %v155_v16 }
  0x8e   :  { %176 = vst.msk [vmem:[%s351_s2 + $0x30] sm:$0xf] %vm163_vm2, %v159_v17 }
  0x8f   :  { %165 = vst.msk [vmem:[%s351_s2 + $0x4] sm:$0xf] %vm163_vm2, %v148_v20 }
  0x90   :  { %169 = vst.msk [vmem:[%s351_s2 + $0x14] sm:$0xf] %vm163_vm2, %v152_v21 }
  0x92   :  { %v129_v22 = vpop.f32.mrf.mxu2  ;;  %v139_v23 = vpop.f32.mrf.mxu3 }
  0x93   :  { %v156_v24 = vpack.c.bf16 %v129_v22, %v129_v22  ;;  %v160_v25 = vpack.c.bf16 %v139_v23, %v139_v23  ;;  %v112_v26 = vpop.f32.mrf.mxu0  ;;  %v122_v27 = vpop.f32.mrf.mxu1 }
  0x94   :  { %v149_v28 = vpack.c.bf16 %v112_v26, %v112_v26  ;;  %v153_v29 = vpack.c.bf16 %v122_v27, %v122_v27 }
  0x95   :  { %173 = vst.msk [vmem:[%s351_s2 + $0x24] sm:$0xf] %vm163_vm2, %v156_v24 }
  0x96   :  { %177 = vst.msk [vmem:[%s351_s2 + $0x34] sm:$0xf] %vm163_vm2, %v160_v25 }
  0x97   :  { %166 = vst.msk [vmem:[%s351_s2 + $0x8] sm:$0xf] %vm163_vm2, %v149_v28 }
  0x98   :  { %170 = vst.msk [vmem:[%s351_s2 + $0x18] sm:$0xf] %vm163_vm2, %v153_v29 }
  0x9a   :  { %v132_v30 = vpop.f32.mrf.mxu2  ;;  %v142_v31 = vpop.f32.mrf.mxu3 }
  0x9b   :  { %v157_v32 = vpack.c.bf16 %v132_v30, %v132_v30  ;;  %v161_v33 = vpack.c.bf16 %v142_v31, %v142_v31  ;;  %v114_v34 = vpop.f32.mrf.mxu0  ;;  %v124_v35 = vpop.f32.mrf.mxu1 }
  0x9c   :  { %v150_v36 = vpack.c.bf16 %v114_v34, %v114_v34  ;;  %v154_v37 = vpack.c.bf16 %v124_v35, %v124_v35 }
  0x9d   :  { %174 = vst.msk [vmem:[%s351_s2 + $0x28] sm:$0xf] %vm163_vm2, %v157_v32 }
  0x9e   :  { %178 = vst.msk [vmem:[%s351_s2 + $0x38] sm:$0xf] %vm163_vm2, %v161_v33 }
  0x9f   :  { %167 = vst.msk [vmem:[%s351_s2 + $0xc] sm:$0xf] %vm163_vm2, %v150_v36 }
  0xa0   :  { %171 = vst.msk [vmem:[%s351_s2 + $0x1c] sm:$0xf] %vm163_vm2, %v154_v37 }
  0xa2   :  { %v134_v38 = vpop.f32.mrf.mxu2  ;;  %v144_v39 = vpop.f32.mrf.mxu3 }
  0xa3   :  { %v158_v40 = vpack.c.bf16 %v134_v38, %v134_v38  ;;  %v162_v41 = vpack.c.bf16 %v144_v39, %v144_v39 }
  0xa5   :  { %175 = vst.msk [vmem:[%s351_s2 + $0x2c] sm:$0xf] %vm163_vm2, %v158_v40 }
  0xa6   :  { %179 = vst.msk [vmem:[%s351_s2 + $0x3c] sm:$0xf] %vm163_vm2, %v162_v41 }

// kernel: gcn_link_predictor.5
= control target key start
LH: loop header
LB: loop body
LE: loop exit
PB: predicated region body
PF: predicated region fallthrough
CT: control target
= control target key end

     0   :  { %vm225_vm0 = vcmask 130048   ;;  %v370_v55 = vmov 0   ;;  %s462_s1 = inlined_call_operand.vmem [shape: bf16[128,16], index: 1, kind: input, shape index: {}]   ;;  %s463_s0 = inlined_call_operand.vmem [shape: bf16[128,128], index: 0, kind: input, shape index: {}]   ;;  %s464_s3 = inlined_call_operand.vmem [shape: f32[2,1], index: 3, kind: input, shape index: {}]   ;;  %s465_s2 = inlined_call_operand.vmem [shape: bf16[2,16], index: 2, kind: input, shape index: {}]   ;;  %s466_s4 = inlined_call_operand.vmem [shape: f32[2,128], index: 4, kind: output, shape index: {}]  }
   0x1   :  { %v351_v0 = vld [vmem:[%s462_s1 + $0x38] sm:$0xff]  ;;  %v350_v1 = vld [vmem:[%s462_s1 + $0x30] sm:$0xff]  ;;  %v349_v2 = vld [vmem:[%s462_s1 + $0x28] sm:$0xff]  ;;  %369 = vset.pattern.permute.xlu0 %v370_v55 }
   0x2   :  { %352 = vmatpush.bf16.msra.mxu2 %v351_v0  ;;  %353 = vmatpush.bf16.msra.mxu3 %v351_v0  ;;  %v348_v3 = vld [vmem:[%s462_s1 + $0x20] sm:$0xff]  ;;  %v347_v4 = vld [vmem:[%s462_s1 + $0x18] sm:$0xff]  ;;  %v346_v5 = vld [vmem:[%s462_s1 + $0x10] sm:$0xff] }
   0x3   :  { %145 = vmatpush.bf16.msra.mxu0 %v351_v0  ;;  %v345_v6 = vld [vmem:[%s462_s1 + $0x8] sm:$0xff]  ;;  %v344_v7 = vld [vmem:[%s462_s1] sm:$0xff]  ;;  %v339_v8 = vld [vmem:[%s463_s0 + $0x18] sm:$0xff] }
   0x4   :  { %v342_v9 = vld [vmem:[%s463_s0 + $0x30] sm:$0xff]  ;;  %v336_v10 = vld [vmem:[%s463_s0] sm:$0xff]  ;;  %v343_v12 = vld [vmem:[%s463_s0 + $0x38] sm:$0xff] }
   0x5   :  { %v340_v11 = vld [vmem:[%s463_s0 + $0x20] sm:$0xff]  ;;  %v337_v13 = vld [vmem:[%s463_s0 + $0x8] sm:$0xff]  ;;  %v338_v15 = vld [vmem:[%s463_s0 + $0x10] sm:$0xff] }
   0x6   :  { %354 = vmatpush.bf16.msra.mxu2 %v350_v1  ;;  %355 = vmatpush.bf16.msra.mxu3 %v350_v1  ;;  %v341_v14 = vld [vmem:[%s463_s0 + $0x28] sm:$0xff]  ;;  %v219_v54 = vld [vmem:[%s464_s3] sm:$0x3] }
   0x7   :  { %146 = vmatpush.bf16.msra.mxu0 %v350_v1  ;;  %222 = vperm.xlu0 %369, %v219_v54  }
   0xa   :  { %356 = vmatpush.bf16.msra.mxu2 %v349_v2  ;;  %357 = vmatpush.bf16.msra.mxu3 %v349_v2 }
   0xb   :  { %147 = vmatpush.bf16.msra.mxu0 %v349_v2  ;;  %v218_v2 = vld [vmem:[%s465_s2] sm:$0x1] }
   0xe   :  { %358 = vmatpush.bf16.msra.mxu2 %v348_v3  ;;  %359 = vmatpush.bf16.msra.mxu3 %v348_v3 }
   0xf   :  { %148 = vmatpush.bf16.msra.mxu0 %v348_v3 }
  0x12   :  { %360 = vmatpush.bf16.msra.mxu2 %v347_v4  ;;  %361 = vmatpush.bf16.msra.mxu3 %v347_v4 }
  0x13   :  { %149 = vmatpush.bf16.msra.mxu0 %v347_v4 }
  0x16   :  { %362 = vmatpush.bf16.msra.mxu2 %v346_v5  ;;  %363 = vmatpush.bf16.msra.mxu3 %v346_v5 }
  0x17   :  { %150 = vmatpush.bf16.msra.mxu0 %v346_v5 }
  0x1a   :  { %364 = vmatpush.bf16.msra.mxu2 %v345_v6  ;;  %365 = vmatpush.bf16.msra.mxu3 %v345_v6 }
  0x1b   :  { %151 = vmatpush.bf16.msra.mxu0 %v345_v6 }
  0x1e   :  { %366 = vmatpush.bf16.msra.mxu2 %v344_v7  ;;  %367 = vmatpush.bf16.msra.mxu3 %v344_v7 }
  0x1f   :  { %152 = vmatpush.bf16.msra.mxu0 %v344_v7 }
  0x21   :  { %168 = vmatmul.bf16.vlgmr.msra.gmra.mxu2 %v339_v8  ;;  %183 = vmatmul.bf16.vlgmr.msra.gmra.mxu3 %v342_v9 }
  0x22   :  { %153 = vmatmul.bf16.vlgmr.msra.gmra.mxu0 %v336_v10 }
  0x31   :  { %173 = vmatmul.bf16.gmra.mxu2 %v340_v11  ;;  %188 = vmatmul.bf16.gmra.mxu3 %v343_v12 }
  0x32   :  { %158 = vmatmul.bf16.gmra.mxu0 %v337_v13 }
  0x41   :  { %178 = vmatmul.bf16.gmra.mxu2 %v341_v14 }
  0x42   :  { %163 = vmatmul.bf16.gmra.mxu0 %v338_v15 }
  0x79   :  { %v223_v3 = vpop.permute.xlu0 %222 }
  0x9f   :  { %v154_v18 = vpop.f32.mrf.mxu0 }
  0xa0   :  { %v194_v61 = vmax.f32 %v154_v18, 0.0 }
  0xa4   :  { %v169_v16 = vpop.f32.mrf.mxu2  ;;  %v184_v17 = vpop.f32.mrf.mxu3 }
  0xa5   :  { %v206_v32 = vmax.f32 %v184_v17, 0.0  ;;  %v200_v48 = vmax.f32 %v169_v16, 0.0 }
  0xa7   :  { %v156_v23 = vpop.f32.mrf.mxu0 }
  0xa8   :  { %v195_v62 = vmax.f32 %v156_v23, 0.0 }
  0xaa   :  { %v210_v0 = vpack.c.bf16 %v195_v62, %v194_v61 }
  0xac   :  { %v171_v19 = vpop.f32.mrf.mxu2  ;;  %v186_v20 = vpop.f32.mrf.mxu3  ;;  %v230_v1 = vsel %vm225_vm0, %v210_v0, 0 }
  0xad   :  { %v207_v30 = vmax.f32 %v186_v20, 0.0  ;;  %v201_v46 = vmax.f32 %v171_v19, 0.0 }
  0xaf   :  { %v159_v29 = vpop.f32.mrf.mxu0  ;;  %v216_v34 = vpack.c.bf16 %v207_v30, %v206_v32  ;;  %v213_v49 = vpack.c.bf16 %v201_v46, %v200_v48 }
  0xb0   :  { %v196_v57 = vmax.f32 %v159_v29, 0.0 }
  0xb1   :  { %v248_v35 = vsel %vm225_vm0, %v216_v34, 0  ;;  %v239_v53 = vsel %vm225_vm0, %v213_v49, 0 }
  0xb4   :  { %v174_v21 = vpop.f32.mrf.mxu2  ;;  %v189_v22 = vpop.f32.mrf.mxu3 }
  0xb5   :  { %v208_v26 = vmax.f32 %v189_v22, 0.0  ;;  %v202_v43 = vmax.f32 %v174_v21, 0.0 }
  0xb7   :  { %v161_v36 = vpop.f32.mrf.mxu0 }
  0xb8   :  { %v197_v58 = vmax.f32 %v161_v36, 0.0 }
  0xba   :  { %v211_v60 = vpack.c.bf16 %v197_v58, %v196_v57 }
  0xbc   :  { %v176_v24 = vpop.f32.mrf.mxu2  ;;  %v191_v25 = vpop.f32.mrf.mxu3  ;;  %v233_v63 = vsel %vm225_vm0, %v211_v60, 0 }
  0xbd   :  { %v209_v27 = vmax.f32 %v191_v25, 0.0  ;;  %v203_v41 = vmax.f32 %v176_v24, 0.0 }
  0xbf   :  { %v217_v28 = vpack.c.bf16 %v209_v27, %v208_v26  ;;  %v164_v44 = vpop.f32.mrf.mxu0  ;;  %v214_v45 = vpack.c.bf16 %v203_v41, %v202_v43 }
  0xc0   :  { %v198_v51 = vmax.f32 %v164_v44, 0.0 }
  0xc1   :  { %v251_v31 = vsel %vm225_vm0, %v217_v28, 0  ;;  %v242_v47 = vsel %vm225_vm0, %v214_v45, 0 }
  0xc2   :  { %253 = vmatpush.bf16.xpose.msra.mxu1 %v251_v31 }
  0xc4   :  { %v179_v33 = vpop.f32.mrf.mxu2 }
  0xc5   :  { %v204_v38 = vmax.f32 %v179_v33, 0.0 }
  0xc7   :  { %v166_v50 = vpop.f32.mrf.mxu0 }
  0xc8   :  { %v199_v52 = vmax.f32 %v166_v50, 0.0 }
  0xca   :  { %254 = vmatpush.bf16.xpose.msra.mxu1 %v248_v35  ;;  %v212_v56 = vpack.c.bf16 %v199_v52, %v198_v51 }
  0xcc   :  { %v181_v37 = vpop.f32.mrf.mxu2  ;;  %v236_v59 = vsel %vm225_vm0, %v212_v56, 0 }
  0xcd   :  { %v205_v39 = vmax.f32 %v181_v37, 0.0 }
  0xcf   :  { %v215_v40 = vpack.c.bf16 %v205_v39, %v204_v38 }
  0xd1   :  { %v245_v42 = vsel %vm225_vm0, %v215_v40, 0 }
  0xd2   :  { %255 = vmatpush.bf16.xpose.msra.mxu1 %v245_v42 }
  0xda   :  { %256 = vmatpush.bf16.xpose.msra.mxu1 %v242_v47 }
  0xe2   :  { %257 = vmatpush.bf16.xpose.msra.mxu1 %v239_v53 }
  0xea   :  { %258 = vmatpush.bf16.xpose.msra.mxu1 %v236_v59 }
  0xf2   :  { %259 = vmatpush.bf16.xpose.msra.mxu1 %v233_v63 }
  0xfa   :  { %260 = vmatpush.bf16.xpose.msra.mxu1 %v230_v1 }
 0x101   :  { %335 = vmatmul.msk.bf16.vlgmr.msra.gmra.mxu1 %vm225_vm0, %v218_v2 }
 0x17e   :  { %v262_v4 = vpop.f32.mrf.mxu1 }
 0x17f   :  { %v263_v5 = vadd.f32 %v262_v4, %v223_v3 }
 0x181   :  { %266 = vst [vmem:[%s466_s4] sm:$0x3] %v263_v5 }
 0x186   :  { %v264_v6 = vpop.f32.mrf.mxu1 }

</bundles_post_ra>
